<compile_context>
chip_gen: v7x
topology: tpu7x:2x2x1
jax: 0.10.0
libtpu: 0.0.40
codegen_flags: <defaults>
</compile_context>

<pallas_src>
import functools

import jax
import jax.numpy as jnp
from jax import lax
from jax.experimental import pallas as pl
from jax.experimental.pallas import tpu as pltpu

LANES = 128
_PAD_LOGIT = -1e30   # padding logit (target 0): BCE term and relu(hinge) are exactly 0


def _round_up(a, b):
    return ((a + b - 1) // b) * b


def _bce_lovasz_kernel(gts_ref,                       # (1,) int32 scalar prefetch (SMEM)
                       logits_ref, targets_ref,       # (TR,128) f32 / bf16  (original order)
                       err_ref, gt_ref,               # (TR,128) f32 / bf16  (sorted order)
                       t_ref, s_ref,                  # (128,128) / (TR,TR) bf16 constants
                       out_ref,                       # (1,1) f32
                       bce_acc, lov_acc, cum_acc,     # (1,1) f32 VMEM scratch
                       *, bce_weight, inv_n):
    pid = pl.program_id(0)
    nblk = pl.num_programs(0)
    TR = logits_ref.shape[0]

    @pl.when(pid == 0)
    def _init():
        bce_acc[...] = jnp.zeros_like(bce_acc)
        lov_acc[...] = jnp.zeros_like(lov_acc)
        cum_acc[...] = jnp.zeros_like(cum_acc)

    x = logits_ref[...]                            # f32
    y = targets_ref[...].astype(jnp.float32)       # 0/1, exact in bf16
    r = err_ref[...]                               # f32, hinge errors sorted descending
    g_bf = gt_ref[...]                             # bf16, labels permuted by that sort
    g = g_bf.astype(jnp.float32)

    # ----- BCEWithLogitsLoss partial sum (stable form; padding contributes 0) -----
    # (equals log1p(exp(-|x|)) to within f32 rounding since exp(-|x|) <= 1)
    bce_elem = jnp.maximum(x, 0.0) - x * y + jnp.log(1.0 + jnp.exp(-jnp.abs(x)))
    bce_acc[...] += jnp.sum(bce_elem, axis=(0, 1), keepdims=True)

    # ----- Lovasz hinge partial (per_image=False) -----
    gts = gts_ref[0].astype(jnp.float32)           # total positive count (exact int)

    # inclusive within-row cumsum of g on the MXU (bf16 operands, f32 accumulate)
    within = jnp.dot(g_bf, t_ref[...], preferred_element_type=jnp.float32)   # (TR,128)
    # per-row sums come for free from the last cumsum column (no extra XLU reduce)
    row_sum = within[:, LANES - 1:LANES]                                     # (TR,1)
    # exclusive prefix over rows inside this tile (strictly-lower-triangular bf16 matmul;
    # row sums <= 128 are exact in bf16)
    prefix = jnp.dot(s_ref[...],
                     jnp.broadcast_to(row_sum, (TR, LANES)).astype(jnp.bfloat16),
                     preferred_element_type=jnp.float32)                     # (TR,128)
    # global inclusive cumsum = within-row + within-block row prefix + carried prefix
    c = within + prefix + cum_acc[...]

    # global flat index of each element (f32 is exact up to 2**24 elements)
    idx = (lax.broadcasted_iota(jnp.int32, (TR, LANES), 0) * LANES
           + lax.broadcasted_iota(jnp.int32, (TR, LANES), 1))
    idx_f = idx.astype(jnp.float32) + (pid * (TR * LANES)).astype(jnp.float32)

    # jaccard[i]   = 1 - (gts - c[i])   / (gts + (i+1) - c[i])
    # jaccard[i-1] uses c[i-1] = c[i] - g[i];  grad[i] = jaccard[i] - jaccard[i-1]
    union = gts + (idx_f + 1.0) - c
    jac = 1.0 - (gts - c) * pl.reciprocal(union, approx=False)

    c_prev = c - g
    union_prev = gts + idx_f - c_prev
    is_first = idx_f == 0.0
    safe_up = jnp.where(is_first, 1.0, union_prev)
    jac_prev = jnp.where(is_first, 0.0,
                         1.0 - (gts - c_prev) * pl.reciprocal(safe_up, approx=False))
    grad = jac - jac_prev

    lov_acc[...] += jnp.sum(jnp.maximum(r, 0.0) * grad, axis=(0, 1), keepdims=True)

    # carry the running cumsum of g into the next tile
    cum_acc[...] = c[TR - 1:TR, LANES - 1:LANES]

    @pl.when(pid == nblk - 1)
    def _finalize():
        out_ref[...] = (bce_weight * (bce_acc[...] * inv_n)
                        + (1.0 - bce_weight) * lov_acc[...])


def bce_lovasz_loss(logits, targets, bce_weight=0.7, tile_rows=512):
    """Matches BCELovaszLoss(bce_weight)(logits, targets, weight=None)."""
    lf = logits.reshape(-1).astype(jnp.float32)
    tf = targets.reshape(-1).astype(jnp.float32)
    n = lf.shape[0]

    # Tile geometry: (tile_rows x 128) blocks; pad the flat streams so the grid
    # divides evenly.  Padding (logit=-1e30, target=0) contributes exactly 0 to
    # both loss terms and sorts to the tail of the hinge-error sort.
    rows = _round_up(n, LANES) // LANES
    tr = min(tile_rows, _round_up(rows, 8))
    rows_pad = _round_up(rows, tr)
    grid_n = rows_pad // tr
    pad = rows_pad * LANES - n

    lf_p = jnp.pad(lf, (0, pad), constant_values=_PAD_LOGIT)
    tf_p = jnp.pad(tf, (0, pad))                       # padded targets = 0

    # TODO(synk): descending sort has no Pallas TPU equivalent; done in the
    # wrapper as ONE fused key/value sort (replaces argsort + two gathers).
    signs = 2.0 * tf_p - 1.0
    errors = 1.0 - lf_p * signs                        # padded -> ~-1e30, sorts last
    neg_sorted, gt_sorted = lax.sort_key_val(-errors, tf_p)
    err_sorted = -neg_sorted

    gts = jnp.sum((tf > 0.5).astype(jnp.int32)).reshape(1)   # exact positive count

    shape2d = (rows_pad, LANES)
    logits2d = lf_p.reshape(shape2d)
    targets2d = tf_p.astype(jnp.bfloat16).reshape(shape2d)
    err2d = err_sorted.reshape(shape2d)
    gt2d = gt_sorted.astype(jnp.bfloat16).reshape(shape2d)

    # constant triangular matrices for the MXU cumulative sums (0/1, exact in bf16)
    lane = jnp.arange(LANES)
    t_mat = (lane[:, None] <= lane[None, :]).astype(jnp.bfloat16)      # (128,128) inclusive
    row = jnp.arange(tr)
    s_mat = (row[None, :] < row[:, None]).astype(jnp.bfloat16)         # (TR,TR) strictly lower

    kernel = functools.partial(_bce_lovasz_kernel,
                               bce_weight=float(bce_weight),
                               inv_n=1.0 / float(n))

    tile_spec = pl.BlockSpec((tr, LANES), lambda i, gts_ref: (i, 0))
    out = pl.pallas_call(
        kernel,
        out_shape=jax.ShapeDtypeStruct((1, 1), jnp.float32),
        grid_spec=pltpu.PrefetchScalarGridSpec(
            num_scalar_prefetch=1,
            grid=(grid_n,),
            in_specs=[
                tile_spec,                                                 # logits (f32)
                tile_spec,                                                 # targets (bf16)
                tile_spec,                                                 # err_sorted (f32)
                tile_spec,                                                 # gt_sorted (bf16)
                pl.BlockSpec((LANES, LANES), lambda i, gts_ref: (0, 0)),   # T (constant)
                pl.BlockSpec((tr, tr), lambda i, gts_ref: (0, 0)),         # S (constant)
            ],
            out_specs=pl.BlockSpec((1, 1), lambda i, gts_ref: (0, 0)),
            scratch_shapes=[pltpu.VMEM((1, 1), jnp.float32)] * 3,
        ),
        compiler_params=pltpu.CompilerParams(
            dimension_semantics=("arbitrary",)),       # sequential carried scan
    )(gts, logits2d, targets2d, err2d, gt2d, t_mat, s_mat)
    return out[0, 0]


if __name__ == "__main__":
    key = jax.random.PRNGKey(0)
    k1, k2 = jax.random.split(key)
    # PyTorch-style NCHW inputs; targets are binary masks.
    logits = jax.random.normal(k1, (2, 4, 16, 16), dtype=jnp.float32)
    targets = (jax.random.uniform(k2, (2, 4, 16, 16)) > 0.5).astype(jnp.float32)

    loss = bce_lovasz_loss(logits, targets, bce_weight=0.7)
    jax.block_until_ready(loss)
    print("KERNEL_OK")
</pallas_src>

<mosaic_0001>
module attributes {stable_mosaic.version = 11 : i64} {
  func.func @_bce_lovasz_kernel(%arg0: i32, %arg1: memref<1xi32, #tpu.memory_space<smem>>, %arg2: memref<16x128xf32, #tpu.memory_space<vmem>>, %arg3: memref<16x128xbf16, #tpu.memory_space<vmem>>, %arg4: memref<16x128xf32, #tpu.memory_space<vmem>>, %arg5: memref<16x128xbf16, #tpu.memory_space<vmem>>, %arg6: memref<128x128xbf16, #tpu.memory_space<vmem>>, %arg7: memref<16x16xbf16, #tpu.memory_space<vmem>>, %arg8: memref<1x1xf32, #tpu.memory_space<vmem>>, %arg9: memref<1x1xf32, #tpu.memory_space<vmem>>, %arg10: memref<1x1xf32, #tpu.memory_space<vmem>>, %arg11: memref<1x1xf32, #tpu.memory_space<vmem>>) attributes {dimension_semantics = [#tpu.dimension_semantics<arbitrary>], iteration_bounds = array<i64: 1>, scalar_prefetch = 1 : i64, scratch_operands = 3 : i64, tpu.core_type = #tpu.core_type<tc>, window_params = [{transform_indices = @transform_0, window_bounds = array<i64: 16, 128>}, {transform_indices = @transform_1, window_bounds = array<i64: 16, 128>}, {transform_indices = @transform_2, window_bounds = array<i64: 16, 128>}, {transform_indices = @transform_3, window_bounds = array<i64: 16, 128>}, {pipeline_mode = #tpu.pipeline_mode<synchronous>, transform_indices = @transform_4, window_bounds = array<i64: 128, 128>}, {pipeline_mode = #tpu.pipeline_mode<synchronous>, transform_indices = @transform_5, window_bounds = array<i64: 16, 16>}, {pipeline_mode = #tpu.pipeline_mode<synchronous>, transform_indices = @transform_6, window_bounds = array<i64: 1, 1>}]} {
    %c0_i32 = arith.constant 0 : i32
    %0 = arith.cmpi eq, %arg0, %c0_i32 : i32
    %1 = arith.extui %0 : i1 to i32
    %c0_i32_0 = arith.constant 0 : i32
    %2 = arith.cmpi ne, %1, %c0_i32_0 : i32
    scf.if %2 {
      %cst_40 = arith.constant 0.000000e+00 : f32
      %97 = vector.broadcast %cst_40 : f32 to vector<1x1xf32>
      %c0_41 = arith.constant 0 : index
      %c0_42 = arith.constant 0 : index
      %98 = vector.load %arg9[%c0_41, %c0_42] : memref<1x1xf32, #tpu.memory_space<vmem>>, vector<1x1xf32>
      tpu.vector_store %arg9[%c0_41, %c0_42], %97 {strides = array<i32>} : memref<1x1xf32, #tpu.memory_space<vmem>>, vector<1x1xf32>,
      %cst_43 = arith.constant 0.000000e+00 : f32
      %99 = vector.broadcast %cst_43 : f32 to vector<1x1xf32>
      %c0_44 = arith.constant 0 : index
      %c0_45 = arith.constant 0 : index
      %100 = vector.load %arg10[%c0_44, %c0_45] : memref<1x1xf32, #tpu.memory_space<vmem>>, vector<1x1xf32>
      tpu.vector_store %arg10[%c0_44, %c0_45], %99 {strides = array<i32>} : memref<1x1xf32, #tpu.memory_space<vmem>>, vector<1x1xf32>,
      %cst_46 = arith.constant 0.000000e+00 : f32
      %101 = vector.broadcast %cst_46 : f32 to vector<1x1xf32>
      %c0_47 = arith.constant 0 : index
      %c0_48 = arith.constant 0 : index
      %102 = vector.load %arg11[%c0_47, %c0_48] : memref<1x1xf32, #tpu.memory_space<vmem>>, vector<1x1xf32>
      tpu.vector_store %arg11[%c0_47, %c0_48], %101 {strides = array<i32>} : memref<1x1xf32, #tpu.memory_space<vmem>>, vector<1x1xf32>,
    } else {
    }
    %c0 = arith.constant 0 : index
    %c0_1 = arith.constant 0 : index
    %3 = vector.load %arg2[%c0, %c0_1] : memref<16x128xf32, #tpu.memory_space<vmem>>, vector<16x128xf32>
    %c0_2 = arith.constant 0 : index
    %c0_3 = arith.constant 0 : index
    %4 = vector.load %arg3[%c0_2, %c0_3] : memref<16x128xbf16, #tpu.memory_space<vmem>>, vector<16x128xbf16>
    %5 = arith.extf %4 : vector<16x128xbf16> to vector<16x128xf32>
    %c0_4 = arith.constant 0 : index
    %c0_5 = arith.constant 0 : index
    %6 = vector.load %arg4[%c0_4, %c0_5] : memref<16x128xf32, #tpu.memory_space<vmem>>, vector<16x128xf32>
    %c0_6 = arith.constant 0 : index
    %c0_7 = arith.constant 0 : index
    %7 = vector.load %arg5[%c0_6, %c0_7] : memref<16x128xbf16, #tpu.memory_space<vmem>>, vector<16x128xbf16>
    %8 = arith.extf %7 : vector<16x128xbf16> to vector<16x128xf32>
    %cst = arith.constant 0.000000e+00 : f32
    %9 = vector.broadcast %cst : f32 to vector<16x128xf32>
    %10 = arith.maximumf %3, %9 : vector<16x128xf32>
    %11 = arith.mulf %3, %5 : vector<16x128xf32>
    %12 = arith.subf %10, %11 : vector<16x128xf32>
    %13 = math.absf %3 : vector<16x128xf32>
    %cst_8 = arith.constant 0.000000e+00 : f32
    %14 = vector.broadcast %cst_8 : f32 to vector<16x128xf32>
    %15 = arith.subf %14, %13 : vector<16x128xf32>
    %16 = math.exp %15 : vector<16x128xf32>
    %cst_9 = arith.constant 1.000000e+00 : f32
    %17 = vector.broadcast %cst_9 : f32 to vector<16x128xf32>
    %18 = arith.addf %17, %16 : vector<16x128xf32>
    %19 = math.log %18 : vector<16x128xf32>
    %20 = arith.addf %12, %19 : vector<16x128xf32>
    %c0_10 = arith.constant 0 : index
    %c0_11 = arith.constant 0 : index
    %21 = vector.load %arg9[%c0_10, %c0_11] : memref<1x1xf32, #tpu.memory_space<vmem>>, vector<1x1xf32>
    %22 = vector.shape_cast %20 : vector<16x128xf32> to vector<1x16x128xf32>
    %cst_12 = arith.constant dense<0.000000e+00> : vector<1xf32>
    %23 = vector.multi_reduction <add>, %22, %cst_12 [1, 2] : vector<1x16x128xf32> to vector<1xf32>
    %24 = vector.shape_cast %23 : vector<1xf32> to vector<1x1x1xf32>
    %25 = vector.extract %24[0, 0, 0] : f32 from vector<1x1x1xf32>
    %26 = vector.broadcast %25 : f32 to vector<1x1xf32>
    %27 = arith.addf %21, %26 : vector<1x1xf32>
    %c0_13 = arith.constant 0 : index
    %c0_14 = arith.constant 0 : index
    %28 = vector.load %arg9[%c0_13, %c0_14] : memref<1x1xf32, #tpu.memory_space<vmem>>, vector<1x1xf32>
    tpu.vector_store %arg9[%c0_13, %c0_14], %27 {strides = array<i32>} : memref<1x1xf32, #tpu.memory_space<vmem>>, vector<1x1xf32>,
    %c0_15 = arith.constant 0 : index
    %29 = memref.load %arg1[%c0_15] : memref<1xi32, #tpu.memory_space<smem>>
    %30 = arith.sitofp %29 : i32 to f32
    %c0_16 = arith.constant 0 : index
    %c0_17 = arith.constant 0 : index
    %31 = vector.load %arg6[%c0_16, %c0_17] : memref<128x128xbf16, #tpu.memory_space<vmem>>, vector<128x128xbf16>
    %cst_18 = arith.constant dense<0.000000e+00> : vector<16x128xf32>
    %32 = tpu.matmul %7, %31, %cst_18 {dimension_numbers = #tpu.dot_dimension_numbers<[1], [0], [0], [1], [0, 0, 1, 1], [], []>} : vector<16x128xbf16>, vector<128x128xbf16>, vector<16x128xf32> -> vector<16x128xf32>
    %33 = vector.extract_strided_slice %32 {offsets = [0, 127], sizes = [16, 1], strides = [1, 1]} : vector<16x128xf32> to vector<16x1xf32>
    %c0_19 = arith.constant 0 : index
    %c0_20 = arith.constant 0 : index
    %34 = vector.load %arg7[%c0_19, %c0_20] : memref<16x16xbf16, #tpu.memory_space<vmem>>, vector<16x16xbf16>
    %35 = vector.shape_cast %33 : vector<16x1xf32> to vector<16x1xf32>
    %36 = vector.broadcast %35 : vector<16x1xf32> to vector<16x128xf32>
    %37 = arith.truncf %36 : vector<16x128xf32> to vector<16x128xbf16>
    %cst_21 = arith.constant dense<0.000000e+00> : vector<16x128xf32>
    %38 = tpu.matmul %34, %37, %cst_21 {dimension_numbers = #tpu.dot_dimension_numbers<[1], [0], [0], [1], [0, 0, 1, 1], [], []>} : vector<16x16xbf16>, vector<16x128xbf16>, vector<16x128xf32> -> vector<16x128xf32>
    %39 = arith.addf %32, %38 : vector<16x128xf32>
    %c0_22 = arith.constant 0 : index
    %c0_23 = arith.constant 0 : index
    %40 = vector.load %arg11[%c0_22, %c0_23] : memref<1x1xf32, #tpu.memory_space<vmem>>, vector<1x1xf32>
    %41 = vector.broadcast %40 : vector<1x1xf32> to vector<16x128xf32>
    %42 = arith.addf %39, %41 : vector<16x128xf32>
    %43 = tpu.iota {dimensions = array<i32: 0>} : vector<16x128xi32>
    %c128_i32 = arith.constant 128 : i32
    %44 = vector.broadcast %c128_i32 : i32 to vector<16x128xi32>
    %45 = arith.muli %43, %44 : vector<16x128xi32>
    %46 = tpu.iota {dimensions = array<i32: 1>} : vector<16x128xi32>
    %47 = arith.addi %45, %46 : vector<16x128xi32>
    %48 = arith.sitofp %47 : vector<16x128xi32> to vector<16x128xf32>
    %c2048_i32 = arith.constant 2048 : i32
    %49 = arith.muli %arg0, %c2048_i32 : i32
    %50 = arith.sitofp %49 : i32 to f32
    %51 = vector.broadcast %50 : f32 to vector<16x128xf32>
    %52 = arith.addf %48, %51 : vector<16x128xf32>
    %cst_24 = arith.constant 1.000000e+00 : f32
    %53 = vector.broadcast %cst_24 : f32 to vector<16x128xf32>
    %54 = arith.addf %52, %53 : vector<16x128xf32>
    %55 = vector.broadcast %30 : f32 to vector<16x128xf32>
    %56 = arith.addf %55, %54 : vector<16x128xf32>
    %57 = arith.subf %56, %42 : vector<16x128xf32>
    %58 = vector.broadcast %30 : f32 to vector<16x128xf32>
    %59 = arith.subf %58, %42 : vector<16x128xf32>
    %60 = tpu.reciprocal %57 : vector<16x128xf32> -> vector<16x128xf32>
    %61 = arith.mulf %59, %60 : vector<16x128xf32>
    %cst_25 = arith.constant 1.000000e+00 : f32
    %62 = vector.broadcast %cst_25 : f32 to vector<16x128xf32>
    %63 = arith.subf %62, %61 : vector<16x128xf32>
    %64 = arith.subf %42, %8 : vector<16x128xf32>
    %65 = vector.broadcast %30 : f32 to vector<16x128xf32>
    %66 = arith.addf %65, %52 : vector<16x128xf32>
    %67 = arith.subf %66, %64 : vector<16x128xf32>
    %cst_26 = arith.constant 0.000000e+00 : f32
    %68 = vector.broadcast %cst_26 : f32 to vector<16x128xf32>
    %69 = arith.cmpf oeq, %52, %68 : vector<16x128xf32>
    %cst_27 = arith.constant 1.000000e+00 : f32
    %70 = vector.broadcast %cst_27 : f32 to vector<16x128xf32>
    %71 = arith.select %69, %70, %67 : vector<16x128xi1>, vector<16x128xf32>
    %72 = vector.broadcast %30 : f32 to vector<16x128xf32>
    %73 = arith.subf %72, %64 : vector<16x128xf32>
    %74 = tpu.reciprocal %71 : vector<16x128xf32> -> vector<16x128xf32>
    %75 = arith.mulf %73, %74 : vector<16x128xf32>
    %cst_28 = arith.constant 1.000000e+00 : f32
    %76 = vector.broadcast %cst_28 : f32 to vector<16x128xf32>
    %77 = arith.subf %76, %75 : vector<16x128xf32>
    %cst_29 = arith.constant 0.000000e+00 : f32
    %78 = vector.broadcast %cst_29 : f32 to vector<16x128xf32>
    %79 = arith.select %69, %78, %77 : vector<16x128xi1>, vector<16x128xf32>
    %80 = arith.subf %63, %79 : vector<16x128xf32>
    %c0_30 = arith.constant 0 : index
    %c0_31 = arith.constant 0 : index
    %81 = vector.load %arg10[%c0_30, %c0_31] : memref<1x1xf32, #tpu.memory_space<vmem>>, vector<1x1xf32>
    %cst_32 = arith.constant 0.000000e+00 : f32
    %82 = vector.broadcast %cst_32 : f32 to vector<16x128xf32>
    %83 = arith.maximumf %6, %82 : vector<16x128xf32>
    %84 = arith.mulf %83, %80 : vector<16x128xf32>
    %85 = vector.shape_cast %84 : vector<16x128xf32> to vector<1x16x128xf32>
    %cst_33 = arith.constant dense<0.000000e+00> : vector<1xf32>
    %86 = vector.multi_reduction <add>, %85, %cst_33 [1, 2] : vector<1x16x128xf32> to vector<1xf32>
    %87 = vector.shape_cast %86 : vector<1xf32> to vector<1x1x1xf32>
    %88 = vector.extract %87[0, 0, 0] : f32 from vector<1x1x1xf32>
    %89 = vector.broadcast %88 : f32 to vector<1x1xf32>
    %90 = arith.addf %81, %89 : vector<1x1xf32>
    %c0_34 = arith.constant 0 : index
    %c0_35 = arith.constant 0 : index
    %91 = vector.load %arg10[%c0_34, %c0_35] : memref<1x1xf32, #tpu.memory_space<vmem>>, vector<1x1xf32>
    tpu.vector_store %arg10[%c0_34, %c0_35], %90 {strides = array<i32>} : memref<1x1xf32, #tpu.memory_space<vmem>>, vector<1x1xf32>,
    %92 = vector.extract_strided_slice %42 {offsets = [15, 127], sizes = [1, 1], strides = [1, 1]} : vector<16x128xf32> to vector<1x1xf32>
    %c0_36 = arith.constant 0 : index
    %c0_37 = arith.constant 0 : index
    %93 = vector.load %arg11[%c0_36, %c0_37] : memref<1x1xf32, #tpu.memory_space<vmem>>, vector<1x1xf32>
    tpu.vector_store %arg11[%c0_36, %c0_37], %92 {strides = array<i32>} : memref<1x1xf32, #tpu.memory_space<vmem>>, vector<1x1xf32>,
    %c0_i32_38 = arith.constant 0 : i32
    %94 = arith.cmpi eq, %arg0, %c0_i32_38 : i32
    %95 = arith.extui %94 : i1 to i32
    %c0_i32_39 = arith.constant 0 : i32
    %96 = arith.cmpi ne, %95, %c0_i32_39 : i32
    scf.if %96 {
      %c0_40 = arith.constant 0 : index
      %c0_41 = arith.constant 0 : index
      %97 = vector.load %arg9[%c0_40, %c0_41] : memref<1x1xf32, #tpu.memory_space<vmem>>, vector<1x1xf32>
      %cst_42 = arith.constant 4.8828125E-4 : f32
      %98 = vector.broadcast %cst_42 : f32 to vector<1x1xf32>
      %99 = arith.mulf %97, %98 : vector<1x1xf32>
      %cst_43 = arith.constant 0.699999988 : f32
      %100 = vector.broadcast %cst_43 : f32 to vector<1x1xf32>
      %101 = arith.mulf %100, %99 : vector<1x1xf32>
      %c0_44 = arith.constant 0 : index
      %c0_45 = arith.constant 0 : index
      %102 = vector.load %arg10[%c0_44, %c0_45] : memref<1x1xf32, #tpu.memory_space<vmem>>, vector<1x1xf32>
      %cst_46 = arith.constant 3.000000e-01 : f32
      %103 = vector.broadcast %cst_46 : f32 to vector<1x1xf32>
      %104 = arith.mulf %103, %102 : vector<1x1xf32>
      %105 = arith.addf %101, %104 : vector<1x1xf32>
      %c0_47 = arith.constant 0 : index
      %c0_48 = arith.constant 0 : index
      %106 = vector.load %arg8[%c0_47, %c0_48] : memref<1x1xf32, #tpu.memory_space<vmem>>, vector<1x1xf32>
      tpu.vector_store %arg8[%c0_47, %c0_48], %105 {strides = array<i32>} : memref<1x1xf32, #tpu.memory_space<vmem>>, vector<1x1xf32>,
    } else {
    }
    return
  }
  func.func @transform_0(%arg0: i32, %arg1: memref<1xi32, #tpu.memory_space<smem>>) -> (i32, i32) {
    %c0_i32 = arith.constant 0 : i32
    %c0_i32_0 = arith.constant 0 : i32
    return %arg0, %c0_i32 : i32, i32
  }
  func.func @transform_1(%arg0: i32, %arg1: memref<1xi32, #tpu.memory_space<smem>>) -> (i32, i32) {
    %c0_i32 = arith.constant 0 : i32
    %c0_i32_0 = arith.constant 0 : i32
    return %arg0, %c0_i32 : i32, i32
  }
  func.func @transform_2(%arg0: i32, %arg1: memref<1xi32, #tpu.memory_space<smem>>) -> (i32, i32) {
    %c0_i32 = arith.constant 0 : i32
    %c0_i32_0 = arith.constant 0 : i32
    return %arg0, %c0_i32 : i32, i32
  }
  func.func @transform_3(%arg0: i32, %arg1: memref<1xi32, #tpu.memory_space<smem>>) -> (i32, i32) {
    %c0_i32 = arith.constant 0 : i32
    %c0_i32_0 = arith.constant 0 : i32
    return %arg0, %c0_i32 : i32, i32
  }
  func.func @transform_4(%arg0: i32, %arg1: memref<1xi32, #tpu.memory_space<smem>>) -> (i32, i32) {
    %c0_i32 = arith.constant 0 : i32
    %c0_i32_0 = arith.constant 0 : i32
    %c0_i32_1 = arith.constant 0 : i32
    return %c0_i32, %c0_i32_0 : i32, i32
  }
  func.func @transform_5(%arg0: i32, %arg1: memref<1xi32, #tpu.memory_space<smem>>) -> (i32, i32) {
    %c0_i32 = arith.constant 0 : i32
    %c0_i32_0 = arith.constant 0 : i32
    %c0_i32_1 = arith.constant 0 : i32
    return %c0_i32, %c0_i32_0 : i32, i32
  }
  func.func @transform_6(%arg0: i32, %arg1: memref<1xi32, #tpu.memory_space<smem>>) -> (i32, i32) {
    %c0_i32 = arith.constant 0 : i32
    %c0_i32_0 = arith.constant 0 : i32
    %c0_i32_1 = arith.constant 0 : i32
    return %c0_i32, %c0_i32_0 : i32, i32
  }
}

</mosaic_0001>

<bundles_post_ra>
// kernel: tpu_custom_call.1
= control target key start
LH: loop header
LB: loop body
LE: loop exit
PB: predicated region body
PF: predicated region fallthrough
CT: control target
= control target key end

     0   :  { %13 = vsyncpa [#allocation8], 0  ;;  %s815_s0 = inlined_call_operand.<no memory space> [shape: s32[1], index: 0, kind: input, shape index: {}]   ;;  %s816_s1 = inlined_call_operand.hbm [shape: f32[16,128], index: 1, kind: input, shape index: {}]   ;;  %s817_s2 = inlined_call_operand.hbm [shape: bf16[16,128], index: 2, kind: input, shape index: {}]   ;;  %s818_s3 = inlined_call_operand.hbm [shape: f32[16,128], index: 3, kind: input, shape index: {}]   ;;  %s819_s4 = inlined_call_operand.vmem [shape: bf16[16,128], index: 4, kind: input, shape index: {}]   ;;  %s820_s5 = inlined_call_operand.hbm [shape: bf16[128,128], index: 5, kind: input, shape index: {}]   ;;  %s821_s6 = inlined_call_operand.vmem [shape: bf16[16,16], index: 6, kind: input, shape index: {}]   ;;  %s822_s7 = inlined_call_operand.hbm [shape: f32[1,1], index: 7, kind: output, shape index: {}]  }
   0x1   :  { %14 = vsyncpa [#allocation11], 0 }
   0x2   :  { %15 = vsyncpa [#allocation14], 0 }
   0x3   :  { %16 = vsyncpa [#allocation9], 0  ;;  %s656_s24 = smov [#allocation10]   ;;  %s538_s28 = scalar_lea.hbm %s817_s2, 128 }
   0x4   :  { %s34_s25 = sshll.u32 %s656_s24, 4  ;;  %p539_p0 = scmp.ne.s32.totalorder %s817_s2, %s538_s28  ;;  %s35_s25 = int_to_ptr.vmem [resolvable:$true] %s34_s25 }
   0x5   :  { %p542_p1 = scmp.lt.u32.totalorder %s538_s28, %s817_s2 }
   0x7   :  { %p544_p2 = pnand %p542_p1, %p539_p0 }
   0x9   :  { %547 = shalt.err (!%p544_p2)
}
   0xa   :  { %s548_s10 = scalar_lea.vmem %s35_s25, 128  ;;  %p553_p4 = scmp.lt.s32.totalorder %s35_s25, %s35_s25 }
   0xb   :  { %p549_p3 = scmp.ne.s32.totalorder %s35_s25, %s548_s10  ;;  %p554_p5 = scmp.lt.s32.totalorder %s548_s10, %s548_s10 }
   0xd   :  { %p555_p6 = por %p554_p5, %p553_p4 }
   0xf   :  { %p556_p7 = pnand %p555_p6, %p549_p3 }
  0x11   :  { %559 = shalt.err (!%p556_p7)
}
  0x12   :  { %s657_s11 = smov 64   ;;  %s658_s12 = smov 4  }
  0x13   :  { %40 = dma.hbm_to_vmem [thread:$0]  %s817_s2, 128, %s35_s25, [#allocation11], %s657_s11, %s657_s11, %s658_s12  }
  0x14   :  { %s659_s15 = smov [#allocation7]   ;;  %s560_s19 = scalar_lea.hbm %s816_s1, 256 }
  0x15   :  { %s22_s16 = sshll.u32 %s659_s15, 4  ;;  %p561_p8 = scmp.ne.s32.totalorder %s816_s1, %s560_s19  ;;  %s23_s16 = int_to_ptr.vmem [resolvable:$true] %s22_s16 }
  0x16   :  { %p564_p9 = scmp.lt.u32.totalorder %s560_s19, %s816_s1 }
  0x18   :  { %p566_p10 = pnand %p564_p9, %p561_p8 }
  0x1a   :  { %569 = shalt.err (!%p566_p10)
}
  0x1b   :  { %s570_s24 = scalar_lea.vmem %s23_s16, 256  ;;  %p575_p12 = scmp.lt.s32.totalorder %s23_s16, %s23_s16 }
  0x1c   :  { %p571_p11 = scmp.ne.s32.totalorder %s23_s16, %s570_s24  ;;  %p576_p13 = scmp.lt.s32.totalorder %s570_s24, %s570_s24 }
  0x1e   :  { %p577_p0 = por %p576_p13, %p575_p12 }
  0x20   :  { %p578_p1 = pnand %p577_p0, %p571_p11 }
  0x22   :  { %581 = shalt.err (!%p578_p1)
}
  0x23   :  { %s660_s2 = smov 128   ;;  %s661_s25 = smov 8  }
  0x24   :  { %28 = dma.hbm_to_vmem [thread:$0]  %s816_s1, 256, %s23_s16, [#allocation8], %s660_s2, %s660_s2, %s661_s25  }
  0x25   :  { %s662_s28 = smov [#allocation12]   ;;  %s663_s30 = smov [#allocation13]  }
  0x26   :  { %s46_s29 = sshll.u32 %s662_s28, 4  ;;  %s60_s8 = sshll.u32 %s663_s30, 4  ;;  %s47_s29 = int_to_ptr.vmem [resolvable:$true] %s46_s29  ;;  %s737_s8 = int_to_ptr.vmem [resolvable:$true] %s60_s8 }
  0x27   :  { %s582_s13 = scalar_lea.hbm %s818_s3, 256 }
  0x28   :  { %p583_p2 = scmp.ne.s32.totalorder %s818_s3, %s582_s13  ;;  %p586_p3 = scmp.lt.u32.totalorder %s582_s13, %s818_s3 }
  0x2a   :  { %p588_p4 = pnand %p586_p3, %p583_p2 }
  0x2c   :  { %591 = shalt.err (!%p588_p4)
}
  0x2d   :  { %s592_s1 = scalar_lea.vmem %s47_s29, 256  ;;  %p597_p6 = scmp.lt.s32.totalorder %s47_s29, %s47_s29 }
  0x2e   :  { %p593_p5 = scmp.ne.s32.totalorder %s47_s29, %s592_s1  ;;  %p598_p7 = scmp.lt.s32.totalorder %s592_s1, %s592_s1 }
  0x30   :  { %p599_p8 = por %p598_p7, %p597_p6 }
  0x32   :  { %p600_p9 = pnand %p599_p8, %p593_p5 }
  0x34   :  { %603 = shalt.err (!%p600_p9)
}
  0x35   :  { %52 = dma.hbm_to_vmem [thread:$0]  %s818_s3, 256, %s47_s29, [#allocation11], %s660_s2, %s660_s2, %s661_s25  }
  0x36   :  { %s604_s22 = scalar_lea.hbm %s820_s5, 1024 }
  0x37   :  { %p605_p10 = scmp.ne.s32.totalorder %s820_s5, %s604_s22  ;;  %p608_p11 = scmp.lt.u32.totalorder %s604_s22, %s820_s5 }
  0x39   :  { %p610_p12 = pnand %p608_p11, %p605_p10 }
  0x3b   :  { %613 = shalt.err (!%p610_p12)
}
  0x3c   :  { %s614_s28 = scalar_lea.vmem %s737_s8, 1024  ;;  %p619_p0 = scmp.lt.s32.totalorder %s737_s8, %s737_s8 }
  0x3d   :  { %p615_p13 = scmp.ne.s32.totalorder %s737_s8, %s614_s28  ;;  %p620_p1 = scmp.lt.s32.totalorder %s614_s28, %s614_s28 }
  0x3f   :  { %p621_p2 = por %p620_p1, %p619_p0 }
  0x41   :  { %p622_p3 = pnand %p621_p2, %p615_p13 }
  0x43   :  { %625 = shalt.err (!%p622_p3)
}
  0x44   :  { %66 = dma.hbm_to_vmem [thread:$0]  %s820_s5, 1024, %s737_s8, [#allocation14], %s657_s11, %s657_s11, %s658_s12  }
  0x45   :  { %648 = dma.done.wait [#allocation8], 256  }
  0x46   :  { %649 = vsyncadd [#allocation8], 4294967040 }
  0x47   :  { %650 = dma.done.wait [#allocation11], 384  }
  0x48   :  { %651 = vsyncadd [#allocation11], 4294966912 }
  0x49   :  { %652 = dma.done.wait [#allocation14], 1024  }
  0x4a   :  { %653 = vsyncadd [#allocation14], 4294966272  ;;  %v664_v0 = vmov 0.0   ;;  %vm665_vm0 = vmmov 0   ;;  %v511_v1 = vld [vmem:[#allocation13] sm:$0xff]   ;;  %v512_v2 = vld [vmem:[#allocation13 + $0x8] sm:$0xff]   ;;  %v329_v51 = vlaneseq  ;;  %s140_s29 = scvt.s32.f32 %s815_s0 }
  0x4b   :  { %460 = vmatprep.subr.bf16.mxu0 %v664_v0  ;;  %476 = vmatprep.mubr.msk.bf16.mxu0 %vm665_vm0, %v664_v0  ;;  %v513_v3 = vld [vmem:[#allocation13 + $0x10] sm:$0xff]   ;;  %v514_v4 = vld [vmem:[#allocation13 + $0x18] sm:$0xff]   ;;  %v515_v5 = vld [vmem:[#allocation13 + $0x20] sm:$0xff]   ;;  %v666_v10 = vmov 127   ;;  %vm86_vm1 = vcmask 0   ;;  %v667_v16 = vmov 0  }
  0x4c   :  { %480 = vmatprep.subr.bf16.mxu1 %v664_v0  ;;  %482 = vmatprep.mubr.msk.bf16.mxu1 %vm665_vm0, %v664_v0  ;;  %v516_v6 = vld [vmem:[#allocation13 + $0x28] sm:$0xff]   ;;  %v517_v7 = vld [vmem:[#allocation13 + $0x30] sm:$0xff]   ;;  %v518_v8 = vld [vmem:[#allocation13 + $0x38] sm:$0xff]   ;;  %89 = vst.msk [vmem:[#allocation4] sm:$0x1] %vm86_vm1, %v664_v0  ;;  %vm270_vm2 = vcmask 130048   ;;  %v347_v62 = vstv %s140_s29 }
  0x4d   :  { %461 = vmatpush3.bf16.msra.mxu0 %v511_v1  ;;  %v774_v9 = vld [vmem:[%s819_s4] sm:$0xff]   ;;  %504 = vset.pattern.permute.xlu0 %v666_v10  ;;  %87 = vst.msk [vmem:[#allocation2] sm:$0x1] %vm86_vm1, %v664_v0  ;;  %88 = vst.msk [vmem:[#allocation3] sm:$0x1] %vm86_vm1, %v664_v0  ;;  %v91_v24 = vld [vmem:[#allocation7 + $0x8] sm:$0xff] }
  0x4e   :  { %462 = vmatprep.subr.bf16.mxu0 %v664_v0  ;;  %v520_v22 = vld [vmem:[%s821_s6] sm:$0xff]   ;;  %v109_v26 = vand.u32 2147483647, %v91_v24  ;;  %v446_v35 = vld [vmem:[#allocation10] sm:$0xff]   ;;  %v103_v39 = vmax.f32 %v91_v24, 0.0  ;;  %v330_v52 = vshrl.u32 %v329_v51, 7 }
  0x4f   :  { %v90_v23 = vld [vmem:[#allocation7] sm:$0xff]  ;;  %v447_v36 = vunpack.c.l.bf16 %v446_v35  ;;  %v448_v37 = vunpack.c.h.bf16 %v446_v35  ;;  %v335_v55 = vand.u32 127, %v329_v51  ;;  %s668_s0 = smov 1   ;;  %vm404_vm5 = vcmask 7175   ;;  %s669_s9 = smov [#allocation15]  }
  0x50   :  { %v108_v25 = vand.u32 2147483647, %v90_v23  ;;  %v111_v28 = vsub.f32 0.0, %v109_v26  ;;  %v102_v38 = vmax.f32 %v90_v23, 0.0  ;;  %v331_v53 = vadd.s32 8, %v330_v52  ;;  %v97_v35 = vld [vmem:[#allocation12 + $0x8] sm:$0xff] }
  0x51   :  { %463 = vmatpush3.bf16.msra.mxu0 %v512_v2  ;;  %v104_v40 = vmul.f32 %v447_v36, %v90_v23  ;;  %v105_v41 = vmul.f32 %v448_v37, %v91_v24  ;;  %v332_v54 = vmul.u32 128, %v330_v52  ;;  %v100_v2 = vunpack.c.l.bf16 %v774_v9  ;;  %s422_s10 = sshll.u32 %s669_s9, 4  ;;  %s423_s10 = int_to_ptr.vmem [resolvable:$true] %s422_s10 }
  0x52   :  { %464 = vmatprep.subr.bf16.mxu0 %v664_v0  ;;  %v110_v27 = vsub.f32 0.0, %v108_v25  ;;  %v114_v30 = vmul.f32 1.442695, %v111_v28  ;;  %v333_v56 = vmul.u32 128, %v331_v53  ;;  %s626_s13 = scalar_lea.vmem %s423_s10, 16  ;;  %s630_s14 = scalar_lea.vmem %s423_s10, 32 }
  0x53   :  { %v444_v17 = vld [vmem:[#allocation4] ss:$0 sm:$0xff]  ;;  %v106_v44 = vsub.f32 %v102_v38, %v104_v40  ;;  %v107_v45 = vsub.f32 %v103_v39, %v105_v41  ;;  %v336_v57 = vadd.s32 %v335_v55, %v332_v54  ;;  %p627_p4 = scmp.ne.s32.totalorder %s423_s10, %s626_s13  ;;  %p631_p5 = scmp.lt.s32.totalorder %s423_s10, %s423_s10 }
  0x54   :  { %v112_v29 = vmul.f32 1.442695, %v110_v27  ;;  %v337_v58 = vadd.s32 %v335_v55, %v333_v56  ;;  %p632_p6 = scmp.lt.s32.totalorder %s630_s14, %s626_s13 }
  0x55   :  { %465 = vmatpush3.bf16.msra.mxu0 %v513_v3  ;;  %v338_v59 = vcvt.s32.f32 %v336_v57  ;;  %v124_v57 = vld [vmem:[#allocation2] sm:$0x1] }
  0x56   :  { %466 = vmatprep.subr.bf16.mxu0 %v664_v0  ;;  %522 = vpow2.f32 %v112_v29  ;;  %v339_v60 = vcvt.s32.f32 %v337_v58  ;;  %p633_p7 = por %p632_p6, %p631_p5 }
  0x57   :  { %524 = vpow2.f32 %v114_v30  ;;  %v345_v61 = vadd.f32 1.0, %v338_v59  ;;  %vm366_vm3 = vcmp.eq.f32.partialorder %v338_v59, 0.0 }
  0x58   :  { %v346_v63 = vadd.f32 1.0, %v339_v60  ;;  %vm367_vm4 = vcmp.eq.f32.partialorder %v339_v60, 0.0  ;;  %p634_p8 = pnand %p633_p7, %p627_p4 }
  0x59   :  { %467 = vmatpush3.bf16.msra.mxu0 %v514_v4 }
  0x5a   :  { %468 = vmatprep.subr.bf16.mxu0 %v664_v0  ;;  %v349_v10 = vadd.f32 %v347_v62, %v346_v63 }
  0x5d   :  { %469 = vmatpush3.bf16.msra.mxu0 %v515_v5  ;;  %v348_v5 = vadd.f32 %v347_v62, %v345_v61 }
  0x5e   :  { %470 = vmatprep.subr.bf16.mxu0 %v664_v0 }
  0x60   :  { %v523_v31 = vpop.eup %522 }
  0x61   :  { %471 = vmatpush3.bf16.msra.mxu0 %v516_v6  ;;  %v525_v32 = vpop.eup %524  ;;  %v116_v33 = vadd.f32 1.0, %v523_v31 }
  0x62   :  { %472 = vmatprep.subr.bf16.mxu0 %v664_v0  ;;  %v117_v34 = vadd.f32 1.0, %v525_v32 }
  0x63   :  { %526 = vlog2.f32 %v116_v33 }
  0x64   :  { %528 = vlog2.f32 %v117_v34  ;;  %v96_v34 = vld [vmem:[#allocation12] sm:$0xff] }
  0x65   :  { %473 = vmatpush3.bf16.msra.mxu0 %v517_v7  ;;  %v101_v7 = vunpack.c.h.bf16 %v774_v9 }
  0x66   :  { %474 = vmatprep.subr.bf16.mxu0 %v664_v0 }
  0x69   :  { %475 = vmatpush3.bf16.msra.mxu0 %v518_v8 }
  0x6c   :  { %477 = vmatmul.mubr.bf16.vlgmr.msra.gmra.mrb[0].mxu0 %v774_v9 }
  0x6d   :  { %v527_v42 = vpop.eup %526 }
  0x6e   :  { %v529_v43 = vpop.eup %528  ;;  %v119_v46 = vmul.f32 0.6931472, %v527_v42  ;;  %v383_v42 = vmax.f32 %v96_v34, 0.0 }
  0x6f   :  { %v121_v47 = vmul.f32 0.6931472, %v529_v43  ;;  %v384_v43 = vmax.f32 %v97_v35, 0.0 }
  0x70   :  { %v122_v48 = vadd.f32 %v119_v46, %v106_v44 }
  0x71   :  { %v123_v49 = vadd.f32 %v121_v47, %v107_v45 }
  0x73   :  { %v125_v50 = vadd.f32 %v123_v49, %v122_v48 }
  0x75   :  { %126 = vadd.xlane.f32.xlu1 %v125_v50 }
 0x102   :  { %v127_v50 = vpop.xlane.xlu1 %126 }
 0x103   :  { %v128_v51 = vrot.slane %v127_v50, 4 }
 0x105   :  { %v129_v52 = vadd.f32 %v128_v51, %v127_v50 }
 0x107   :  { %v130_v53 = vrot.slane %v129_v52, 2 }
 0x109   :  { %v131_v54 = vadd.f32 %v130_v53, %v129_v52 }
 0x10b   :  { %v132_v55 = vrot.slane %v131_v54, 1 }
 0x10d   :  { %v133_v56 = vadd.f32 %v132_v55, %v131_v54 }
 0x10f   :  { %486 = vpush %v133_v56 }
 0x13f   :  { %v777_v11 = vpop.f32.mrb[0].mxu0 }
 0x140   :  { %v478_v12 = vpop.f32.mrb[1].mxu0  ;;  %s487_s30 = spop %486 }
 0x141   :  { %v779_v13 = vpop.f32.mrb[2].mxu0  ;;  %v135_v58 = vstv %s487_s30 }
 0x142   :  { %v479_v14 = vpop.f32.mrb[3].mxu0  ;;  %v505_v15 = vpack.i.bf16 %v779_v13, %v777_v11 }
 0x144   :  { %506 = vperm.xlu0 %504, %v505_v15   ;;  %v362_v15 = vadd.f32 %v347_v62, %v338_v59  ;;  %v136_v59 = vadd.f32 %v135_v58, %v124_v57 }
 0x146   :  { %138 = vst.msk [vmem:[#allocation2] sm:$0x1] %vm86_vm1, %v136_v59 }
 0x148   :  { %510 = vset.pattern.permute.xlu0 %v667_v16 }
 0x149   :  { %324 = vperm.xlu0 %510, %v444_v17  }
 0x1c3   :  { %v507_v18 = vpop.permute.xlu0 %506 }
 0x1c4   :  { %v509_v19 = vunpack.i.h.bf16 %v507_v18  ;;  %v508_v20 = vunpack.i.l.bf16 %v507_v18 }
 0x1c6   :  { %v264_v21 = vpack.c.bf16 %v509_v19, %v508_v20  ;;  %v363_v19 = vadd.f32 %v347_v62, %v339_v60 }
 0x1c8   :  { %481 = vmatpush3.bf16.msra.mxu1 %v264_v21  ;;  %v325_v1 = vpop.permute.xlu0 %324 }
 0x1cb   :  { %483 = vmatmul.mubr.msk.bf16.vlgmr.msra.gmra.mrb[0].mxu1 %vm270_vm2, %v520_v22 }
 0x29e   :  { %v308_v0 = vpop.f32.mrb[0].mxu1 }
 0x29f   :  { %v315_v3 = vadd.f32 %v308_v0, %v777_v11  ;;  %v484_v4 = vpop.f32.mrb[1].mxu1 }
 0x2a0   :  { %v311_v6 = vpop.f32.mrb[2].mxu1  ;;  %v382_v4 = vld [vmem:[#allocation3] sm:$0x1] }
 0x2a1   :  { %v316_v8 = vadd.f32 %v311_v6, %v779_v13  ;;  %v327_v12 = vadd.f32 %v325_v1, %v315_v3  ;;  %v485_v14 = vpop.f32.mrb[3].mxu1 }
 0x2a3   :  { %v328_v16 = vadd.f32 %v325_v1, %v316_v8  ;;  %v350_v17 = vsub.f32 %v348_v5, %v327_v12  ;;  %v360_v18 = vsub.f32 %v327_v12, %v100_v2  ;;  %v352_v25 = vsub.f32 %v347_v62, %v327_v12 }
 0x2a5   :  { %v351_v20 = vsub.f32 %v349_v10, %v328_v16  ;;  %v361_v21 = vsub.f32 %v328_v16, %v101_v7  ;;  %530 = vrcp.f32 %v350_v17  ;;  %v364_v11 = vsub.f32 %v362_v15, %v360_v18  ;;  %v409_v7 = vld [vmem:[#allocation2] sm:$0x1] }
 0x2a6   :  { %v353_v26 = vsub.f32 %v347_v62, %v328_v16  ;;  %v370_v27 = vsub.f32 %v347_v62, %v360_v18  ;;  %v410_v8 = vmul.f32 0.00048828125, %v409_v7 }
 0x2a7   :  { %532 = vrcp.f32 %v351_v20  ;;  %v365_v22 = vsub.f32 %v363_v19, %v361_v21  ;;  %v368_v9 = vsel %vm366_vm3, 1.0, %v364_v11  ;;  %v371_v30 = vsub.f32 %v347_v62, %v361_v21 }
 0x2a8   :  { %534 = vrcp.f32 %v368_v9  ;;  %v411_v12 = vmul.f32 0.7, %v410_v8 }
 0x2a9   :  { %v369_v13 = vsel %vm367_vm4, 1.0, %v365_v22 }
 0x2aa   :  { %536 = vrcp.f32 %v369_v13 }
 0x2af   :  { %v531_v23 = vpop.eup %530 }
 0x2b0   :  { %v356_v29 = vmul.f32 %v531_v23, %v352_v25 }
 0x2b1   :  { %v533_v24 = vpop.eup %532 }
 0x2b2   :  { %v535_v28 = vpop.eup %534  ;;  %v357_v32 = vmul.f32 %v533_v24, %v353_v26  ;;  %v358_v38 = vsub.f32 1.0, %v356_v29 }
 0x2b3   :  { %v374_v33 = vmul.f32 %v535_v28, %v370_v27 }
 0x2b4   :  { %v537_v31 = vpop.eup %536  ;;  %v359_v40 = vsub.f32 1.0, %v357_v32 }
 0x2b5   :  { %v375_v36 = vmul.f32 %v537_v31, %v371_v30  ;;  %v376_v37 = vsub.f32 1.0, %v374_v33 }
 0x2b7   :  { %v377_v39 = vsub.f32 1.0, %v375_v36  ;;  %v378_v41 = vsel %vm366_vm3, 0.0, %v376_v37 }
 0x2b8   :  { %v380_v45 = vsub.f32 %v358_v38, %v378_v41 }
 0x2b9   :  { %v379_v44 = vsel %vm367_vm4, 0.0, %v377_v39 }
 0x2ba   :  { %v381_v46 = vsub.f32 %v359_v40, %v379_v44  ;;  %v385_v47 = vmul.f32 %v383_v42, %v380_v45 }
 0x2bc   :  { %v386_v48 = vmul.f32 %v384_v43, %v381_v46 }
 0x2be   :  { %v387_v49 = vadd.f32 %v386_v48, %v385_v47 }
 0x2c0   :  { %388 = vadd.xlane.f32.xlu1 %v387_v49 }
 0x2d1   :  { %401 = vrot.lane.b32.xlu1 %v328_v16, %s668_s0 }
 0x34d   :  { %v389_v60 = vpop.xlane.xlu1 %388 }
 0x34e   :  { %v390_v61 = vrot.slane %v389_v60, 4 }
 0x350   :  { %v391_v62 = vadd.f32 %v390_v61, %v389_v60 }
 0x351   :  { %v402_v63 = vpop.permute.xlu1 %401 }
 0x352   :  { %v392_v0 = vrot.slane %v391_v62, 2  ;;  %405 = vst.msk [vmem:[#allocation4 - $0x7] sm:$0x80] %vm404_vm5, %v402_v63 }
 0x354   :  { %v393_v1 = vadd.f32 %v392_v0, %v391_v62 }
 0x356   :  { %v394_v2 = vrot.slane %v393_v1, 1 }
 0x358   :  { %v395_v3 = vadd.f32 %v394_v2, %v393_v1 }
 0x35a   :  { %488 = vpush %v395_v3 }
 0x38b   :  { %s489_s8 = spop %488 }
 0x38c   :  { %v397_v5 = vstv %s489_s8 }
 0x38d   :  { %v398_v6 = vadd.f32 %v397_v5, %v382_v4 }
 0x38f   :  { %399 = vst.msk [vmem:[#allocation3] sm:$0x1] %vm86_vm1, %v398_v6 }
 0x396   :  { %v412_v10 = vld [vmem:[#allocation3] sm:$0x1] }
 0x397   :  { %v413_v14 = vmul.f32 0.3, %v412_v10 }
 0x399   :  { %v414_v15 = vadd.f32 %v413_v14, %v411_v12 }
 0x39b   :  { %415 = vst.msk [vmem:[#allocation15] sm:$0x1] %vm86_vm1, %v414_v15 }
 0x39c   :  { %637 = shalt.err (!%p634_p8)
}
 0x39d   :  { %s638_s18 = scalar_lea.hbm %s822_s7, 16 }
 0x39e   :  { %p639_p9 = scmp.ne.s32.totalorder %s822_s7, %s638_s18  ;;  %p642_p10 = scmp.lt.u32.totalorder %s638_s18, %s822_s7 }
 0x3a0   :  { %p644_p11 = pnand %p642_p10, %p639_p9 }
 0x3a2   :  { %647 = shalt.err (!%p644_p11)
}
 0x3a3   :  { %425 = dma.vmem_to_hbm [thread:$0]  %s423_s10, 16, %s822_s7, [#allocation9]  }
 0x3a4   :  { %654 = dma.done.wait [#allocation9], 16  }
 0x3a5   :  { %655 = vsyncadd [#allocation9], 4294967280 }
 0x3a6   :  { %429 = vsyncpa [#allocation8], 1 }
 0x3a7   :  { %430 = vsyncpa [#allocation11], 1 }
 0x3a8   :  { %431 = vsyncpa [#allocation14], 1 }
 0x3a9   :  { %432 = vsyncpa [#allocation9], 1 }

</bundles_post_ra>
